<compile_context>
chip_gen: v6e
topology: v6e:2x2x1
jax: 0.10.0
libtpu: 0.0.40
codegen_flags: <defaults>
</compile_context>

<pallas_src>
import functools

import jax
import jax.numpy as jnp
from jax.experimental import pallas as pl
from jax.experimental.pallas import tpu as pltpu


def _round_up(a, b):
    return -(-a // b) * b


def _cdiv(a, b):
    return -(-a // b)


def _onehot_embed_kernel(ids_ref, table_ref, out_ref):
    """One grid step: embed `pack` nodes per 128-lane-multiple output row.

    ids_ref:   (tile_rows, pack)        int32, -1 == inactive / padding
    table_ref: (num_classes, d_pad)     f32, full table, resident every step
    out_ref:   (tile_rows, pack*d_pad)  f32, lane-dense
    """
    rows, pack = ids_ref.shape
    num_classes = table_ref.shape[0]
    table = table_ref[...]
    # Hoisted once per step; compares below broadcast against it.
    k_iota = jax.lax.broadcasted_iota(jnp.int32, (rows, num_classes), 1)

    parts = []
    for j in range(pack):  # static unroll, pack <= 16
        onehot = (ids_ref[:, j:j + 1] == k_iota).astype(table.dtype)
        parts.append(jnp.dot(onehot, table, preferred_element_type=jnp.float32))
    out = parts[0] if pack == 1 else jnp.concatenate(parts, axis=-1)
    out_ref[...] = out.astype(out_ref.dtype)


@functools.partial(jax.jit, static_argnames=("tile_n",))
def integer_feature_encoder(x, emb_table, *, tile_n=8192):
    """Pallas equivalent of IntegerFeatureEncoder.forward: emb_table[x[:, 0]].

    Out-of-range / negative ids yield all-zero rows (torch.nn.Embedding would
    error); valid rows reproduce the corresponding table rows.
    """
    n = x.shape[0]
    num_classes, emb_dim = emb_table.shape

    # ---- lane-dense packing: d_pad divides 128 (or is a multiple of 128) ----
    if emb_dim % 128 == 0:
        d_pad = emb_dim                      # already lane-dense, pack = 1
    elif emb_dim < 128:
        d_pad = 8
        while d_pad < emb_dim:
            d_pad *= 2                       # next pow2 <= 128, divides 128
    else:
        d_pad = _round_up(emb_dim, 128)
    pack = (128 // d_pad) if d_pad < 128 else 1
    width = pack * d_pad                     # always a multiple of 128

    rows = _cdiv(n, pack)                    # packed output rows (exact)

    # ---- tile / grid sizing (static under jit) ----
    max_tile_rows = max(8, tile_n // pack)   # e.g. 8192//4 = 2048 rows ~ 1 MiB out tile
    if rows <= 256:
        tile_rows = rows                     # trivially small N: one full-extent tile
        grid = 1
    else:
        num_tiles = max(2, _cdiv(rows, max_tile_rows))
        if num_tiles % 2:
            num_tiles += 1                   # even grid -> balanced v7x megacore split
        tile_rows = _round_up(_cdiv(rows, num_tiles), 8)
        grid = _cdiv(rows, tile_rows)
    rows_pad = grid * tile_rows              # only the tiny int32 id array is padded

    # ---- id prep: invalid / out-of-range / tail-padding ids -> -1 (zero row) ----
    ids = x[:, 0].astype(jnp.int32)
    ids = jnp.where((ids >= 0) & (ids < num_classes), ids, jnp.int32(-1))
    flat_pad = rows_pad * pack
    if flat_pad > n:
        ids = jnp.concatenate([ids, jnp.full((flat_pad - n,), -1, dtype=jnp.int32)])
    ids_packed = ids.reshape(rows_pad, pack)

    # ---- table: zero-pad feature dim only if needed (no kron, no pack^2 blowup) ----
    table = emb_table
    if d_pad != emb_dim:
        table = jnp.pad(emb_table, ((0, 0), (0, d_pad - emb_dim)))

    # ---- explicit VMEM budget (double-buffered tiles + one-hot staging) ----
    out_tile_b = tile_rows * width * 4
    ids_tile_b = tile_rows * 128 * 4                       # lane-padded in VMEM
    table_b = _round_up(num_classes, 8) * _round_up(d_pad, 128) * 4
    onehot_b = tile_rows * _round_up(num_classes, 128) * 4
    need = 2 * out_tile_b + 2 * ids_tile_b + 2 * table_b + 2 * onehot_b
    vmem_limit = int(min(64 * 2**20, max(32 * 2**20, 2 * need)))

    out_packed = pl.pallas_call(
        _onehot_embed_kernel,
        out_shape=jax.ShapeDtypeStruct((rows, width), emb_table.dtype),
        grid_spec=pltpu.PrefetchScalarGridSpec(
            num_scalar_prefetch=0,
            grid=(grid,),
            in_specs=[
                pl.BlockSpec((tile_rows, pack), lambda i: (i, 0)),
                # Table block == full array; constant index_map keeps it resident.
                pl.BlockSpec((num_classes, d_pad), lambda i: (0, 0)),
            ],
            out_specs=pl.BlockSpec((tile_rows, width), lambda i: (i, 0)),
        ),
        compiler_params=pltpu.CompilerParams(
            dimension_semantics=("parallel",),
            vmem_limit_bytes=vmem_limit,
        ),
        cost_estimate=pl.CostEstimate(
            flops=2 * rows * pack * num_classes * d_pad,
            transcendentals=0,
            bytes_accessed=(rows_pad * pack * 4 + table_b + rows * width * 4),
        ),
    )(ids_packed, table)

    # Contiguous un-pack back to (N, emb_dim); slices only when actually needed.
    out = out_packed.reshape(rows * pack, d_pad)
    if d_pad != emb_dim:
        out = out[:, :emb_dim]
    if rows * pack != n:
        out = out[:n]
    return out


def xavier_uniform(key, shape, dtype=jnp.float32):
    fan_in, fan_out = shape[0], shape[1]
    bound = (6.0 / (fan_in + fan_out)) ** 0.5
    return jax.random.uniform(key, shape, dtype=dtype, minval=-bound, maxval=bound)


if __name__ == "__main__":
    key = jax.random.PRNGKey(0)
    k_w, k_x, k_w2, k_x2, k_w3, k_x3 = jax.random.split(key, 6)

    # --- small demo matching the module (batch.x: [N, F] integer node features) ---
    num_classes, emb_dim, n_nodes, n_feat = 10, 32, 8, 4
    emb_table = xavier_uniform(k_w, (num_classes, emb_dim))
    x = jax.random.randint(k_x, (n_nodes, n_feat), 0, num_classes, dtype=jnp.int32)

    out = jax.block_until_ready(integer_feature_encoder(x, emb_table))
    ref = emb_table[x[:, 0]]
    assert out.shape == (n_nodes, emb_dim)
    assert jnp.allclose(out, ref, atol=1e-5), "mismatch vs reference gather (small)"

    # --- larger case: multi-tile even grid + tail padding of the id array ---
    nc2, ed2, n2, f2 = 7, 16, 3000, 3
    emb_table2 = xavier_uniform(k_w2, (nc2, ed2))
    x2 = jax.random.randint(k_x2, (n2, f2), 0, nc2, dtype=jnp.int32)

    out2 = jax.block_until_ready(integer_feature_encoder(x2, emb_table2, tile_n=1024))
    ref2 = emb_table2[x2[:, 0]]
    assert out2.shape == (n2, ed2)
    assert jnp.allclose(out2, ref2, atol=1e-5), "mismatch vs reference gather (tiled)"

    # --- awkward emb_dim (does not divide 128): padded lanes + wrapper slice ---
    nc3, ed3, n3, f3 = 5, 24, 20, 2
    emb_table3 = xavier_uniform(k_w3, (nc3, ed3))
    x3 = jax.random.randint(k_x3, (n3, f3), 0, nc3, dtype=jnp.int32)

    out3 = jax.block_until_ready(integer_feature_encoder(x3, emb_table3))
    ref3 = emb_table3[x3[:, 0]]
    assert out3.shape == (n3, ed3)
    assert jnp.allclose(out3, ref3, atol=1e-5), "mismatch vs reference gather (padded dim)"

    print("KERNEL_OK")
</pallas_src>

<mosaic_0001>
module attributes {stable_mosaic.version = 11 : i64} {
  func.func @_onehot_embed_kernel(%arg0: i32, %arg1: memref<2x4xi32, #tpu.memory_space<vmem>>, %arg2: memref<10x32xf32, #tpu.memory_space<vmem>>, %arg3: memref<2x128xf32, #tpu.memory_space<vmem>>) attributes {dimension_semantics = [#tpu.dimension_semantics<parallel>], iteration_bounds = array<i64: 1>, scalar_prefetch = 0 : i64, scratch_operands = 0 : i64, tpu.core_type = #tpu.core_type<tc>, window_params = [{transform_indices = @transform_0, window_bounds = array<i64: 2, 4>}, {pipeline_mode = #tpu.pipeline_mode<synchronous>, transform_indices = @transform_1, window_bounds = array<i64: 10, 32>}, {transform_indices = @transform_2, window_bounds = array<i64: 2, 128>}]} {
    %c0 = arith.constant 0 : index
    %c0_0 = arith.constant 0 : index
    %0 = vector.load %arg2[%c0, %c0_0] : memref<10x32xf32, #tpu.memory_space<vmem>>, vector<10x32xf32>
    %1 = tpu.iota {dimensions = array<i32: 1>} : vector<2x10xi32>
    %c0_1 = arith.constant 0 : index
    %c0_2 = arith.constant 0 : index
    %2 = vector.load %arg1[%c0_1, %c0_2] : memref<2x4xi32, #tpu.memory_space<vmem>>, vector<2x1xi32>
    %3 = vector.broadcast %2 : vector<2x1xi32> to vector<2x10xi32>
    %4 = arith.cmpi eq, %3, %1 : vector<2x10xi32>
    %5 = arith.extui %4 : vector<2x10xi1> to vector<2x10xi32>
    %6 = arith.sitofp %5 : vector<2x10xi32> to vector<2x10xf32>
    %cst = arith.constant dense<0.000000e+00> : vector<2x32xf32>
    %7 = tpu.matmul %6, %0, %cst {dimension_numbers = #tpu.dot_dimension_numbers<[1], [0], [0], [1], [0, 0, 1, 1], [], []>} : vector<2x10xf32>, vector<10x32xf32>, vector<2x32xf32> -> vector<2x32xf32>
    %c0_3 = arith.constant 0 : index
    %c1 = arith.constant 1 : index
    %8 = vector.load %arg1[%c0_3, %c1] : memref<2x4xi32, #tpu.memory_space<vmem>>, vector<2x1xi32>
    %9 = vector.broadcast %8 : vector<2x1xi32> to vector<2x10xi32>
    %10 = arith.cmpi eq, %9, %1 : vector<2x10xi32>
    %11 = arith.extui %10 : vector<2x10xi1> to vector<2x10xi32>
    %12 = arith.sitofp %11 : vector<2x10xi32> to vector<2x10xf32>
    %cst_4 = arith.constant dense<0.000000e+00> : vector<2x32xf32>
    %13 = tpu.matmul %12, %0, %cst_4 {dimension_numbers = #tpu.dot_dimension_numbers<[1], [0], [0], [1], [0, 0, 1, 1], [], []>} : vector<2x10xf32>, vector<10x32xf32>, vector<2x32xf32> -> vector<2x32xf32>
    %c0_5 = arith.constant 0 : index
    %c2 = arith.constant 2 : index
    %14 = vector.load %arg1[%c0_5, %c2] : memref<2x4xi32, #tpu.memory_space<vmem>>, vector<2x1xi32>
    %15 = vector.broadcast %14 : vector<2x1xi32> to vector<2x10xi32>
    %16 = arith.cmpi eq, %15, %1 : vector<2x10xi32>
    %17 = arith.extui %16 : vector<2x10xi1> to vector<2x10xi32>
    %18 = arith.sitofp %17 : vector<2x10xi32> to vector<2x10xf32>
    %cst_6 = arith.constant dense<0.000000e+00> : vector<2x32xf32>
    %19 = tpu.matmul %18, %0, %cst_6 {dimension_numbers = #tpu.dot_dimension_numbers<[1], [0], [0], [1], [0, 0, 1, 1], [], []>} : vector<2x10xf32>, vector<10x32xf32>, vector<2x32xf32> -> vector<2x32xf32>
    %c0_7 = arith.constant 0 : index
    %c3 = arith.constant 3 : index
    %20 = vector.load %arg1[%c0_7, %c3] : memref<2x4xi32, #tpu.memory_space<vmem>>, vector<2x1xi32>
    %21 = vector.broadcast %20 : vector<2x1xi32> to vector<2x10xi32>
    %22 = arith.cmpi eq, %21, %1 : vector<2x10xi32>
    %23 = arith.extui %22 : vector<2x10xi1> to vector<2x10xi32>
    %24 = arith.sitofp %23 : vector<2x10xi32> to vector<2x10xf32>
    %cst_8 = arith.constant dense<0.000000e+00> : vector<2x32xf32>
    %25 = tpu.matmul %24, %0, %cst_8 {dimension_numbers = #tpu.dot_dimension_numbers<[1], [0], [0], [1], [0, 0, 1, 1], [], []>} : vector<2x10xf32>, vector<10x32xf32>, vector<2x32xf32> -> vector<2x32xf32>
    %26 = tpu.concatenate %7, %13, %19, %25 in 1 : vector<2x32xf32>, vector<2x32xf32>, vector<2x32xf32>, vector<2x32xf32> -> vector<2x128xf32>
    %c0_9 = arith.constant 0 : index
    %c0_10 = arith.constant 0 : index
    %27 = vector.load %arg3[%c0_9, %c0_10] : memref<2x128xf32, #tpu.memory_space<vmem>>, vector<2x128xf32>
    tpu.vector_store %arg3[%c0_9, %c0_10], %26 {strides = array<i32>} : memref<2x128xf32, #tpu.memory_space<vmem>>, vector<2x128xf32>,
    return
  }
  func.func @transform_0(%arg0: i32) -> (i32, i32) {
    %c0_i32 = arith.constant 0 : i32
    %c0_i32_0 = arith.constant 0 : i32
    return %arg0, %c0_i32 : i32, i32
  }
  func.func @transform_1(%arg0: i32) -> (i32, i32) {
    %c0_i32 = arith.constant 0 : i32
    %c0_i32_0 = arith.constant 0 : i32
    %c0_i32_1 = arith.constant 0 : i32
    return %c0_i32, %c0_i32_0 : i32, i32
  }
  func.func @transform_2(%arg0: i32) -> (i32, i32) {
    %c0_i32 = arith.constant 0 : i32
    %c0_i32_0 = arith.constant 0 : i32
    return %arg0, %c0_i32 : i32, i32
  }
}

</mosaic_0001>

<bundles_post_ra>
// kernel: integer_feature_encoder.1
= control target key start
LH: loop header
LB: loop body
LE: loop exit
PB: predicated region body
PF: predicated region fallthrough
CT: control target
= control target key end

     0   :  { %7 = vsyncpa [#allocation3], 0  ;;  %s466_s9 = smov [#allocation2]   ;;  %s514_s0 = inlined_call_operand.vmem [shape: s32[2,4], index: 0, kind: input, shape index: {}]   ;;  %s515_s1 = inlined_call_operand.hbm [shape: f32[10,32], index: 1, kind: input, shape index: {}]   ;;  %s516_s2 = inlined_call_operand.vmem [shape: f32[2,128], index: 2, kind: output, shape index: {}]  }
   0x1   :  { %s15_s10 = sshll.u32 %s466_s9, 4  ;;  %s16_s10 = int_to_ptr.vmem [resolvable:$true] %s15_s10 }
   0x2   :  { %s452_s11 = scalar_lea.vmem %s16_s10, 256  ;;  %p457_p1 = scmp.lt.s32.totalorder %s16_s10, %s16_s10 }
   0x3   :  { %p453_p0 = scmp.ne.s32.totalorder %s16_s10, %s452_s11  ;;  %p458_p2 = scmp.lt.s32.totalorder %s452_s11, %s452_s11 }
   0x5   :  { %p459_p3 = por %p458_p2, %p457_p1 }
   0x7   :  { %p460_p4 = pnand %p459_p3, %p453_p0 }
   0x9   :  { %463 = shalt.err (!%p460_p4)
}
   0xa   :  { %s467_s12 = smov 128   ;;  %s468_s13 = smov 8  }
   0xb   :  { %21 = dma.hbm_to_vmem [thread:$0]  %s515_s1, 256, %s16_s10, [#allocation3], %s467_s12, %s467_s12, %s468_s13  }
   0xc   :  { %464 = dma.done.wait [#allocation3], 256  }
   0xd   :  { %465 = vsyncadd [#allocation3], 4294967040  ;;  %v469_v0 = vmov 0   ;;  %v470_v1 = vmov 2   ;;  %v471_v2 = vmov 0.0   ;;  %vm472_vm0 = vmmov 0  }
   0xe   :  { %439 = vset.pattern.permute.xlu0 %v469_v0  ;;  %441 = vset.pattern.permute.xlu1 %v470_v1  ;;  %vm40_vm1 = vcmask 1041408   ;;  %v29_v3 = vld [vmem:[%s514_s0] sm:$0x3]  ;;  %v26_v4 = vld [vmem:[#allocation2 + $0x8] sm:$0x3]  ;;  %v473_v6 = vmov 1   ;;  %v27_v8 = vlaneseq }
   0xf   :  { %399 = vmatprep.subr.mxu0 %v471_v2  ;;  %406 = vmatprep.subr.mxu1 %v471_v2  ;;  %v25_v5 = vld [vmem:[#allocation2] sm:$0xff]  ;;  %v474_v7 = vmov 3   ;;  %vm36_vm2 = vcmask 80896   ;;  %s475_s0 = smov 64   ;;  %s476_s1 = smov 32   ;;  %vm363_vm7 = vcmask 261120  }
  0x10   :  { %403 = vmatprep.mubr.msk.f32.mxu0 %vm472_vm0, %v471_v2  ;;  %410 = vmatprep.mubr.msk.f32.mxu1 %vm472_vm0, %v471_v2  ;;  %v28_v9 = vand.u32 127, %v27_v8  ;;  %s477_s18 = smov 96   ;;  %vm365_vm8 = vcmask 523264   ;;  %vm367_vm9 = vcmask 785408  }
  0x11   :  { %31 = vperm.xlu0 %439, %v29_v3   ;;  %194 = vperm.xlu1 %441, %v29_v3  }
  0x12   :  { %400 = vmatpush3.msk.msra.mxu0 %vm40_vm1, %v26_v4  ;;  %407 = vmatpush3.msk.msra.mxu1 %vm40_vm1, %v26_v4 }
  0x13   :  { %401 = vmatprep.subr.mxu0 %v471_v2  ;;  %408 = vmatprep.subr.mxu1 %v471_v2 }
  0x14   :  { %402 = vmatpush3.msra.mxu0 %v25_v5  ;;  %409 = vmatpush3.msra.mxu1 %v25_v5 }
  0x15   :  { %440 = vset.pattern.permute.xlu0 %v473_v6  ;;  %442 = vset.pattern.permute.xlu1 %v474_v7 }
  0x16   :  { %115 = vperm.xlu0 %440, %v29_v3   ;;  %273 = vperm.xlu1 %442, %v29_v3  }
  0x17   :  { %413 = vmatprep.subr.mxu0 %v471_v2  ;;  %420 = vmatprep.subr.mxu1 %v471_v2 }
  0x1a   :  { %443 = vset.pattern.permute.xlu0 %v474_v7 }
  0x8c   :  { %v32_v10 = vpop.permute.xlu0 %31  ;;  %v195_v11 = vpop.permute.xlu1 %194 }
  0x8d   :  { %vm33_vm3 = vcmp.eq.s32.totalorder %v32_v10, %v28_v9  ;;  %vm196_vm4 = vcmp.eq.s32.totalorder %v195_v11, %v28_v9 }
  0x8e   :  { %v375_v12 = vsel %vm33_vm3, 1.0, %v471_v2  ;;  %v381_v13 = vsel %vm196_vm4, 1.0, %v471_v2 }
  0x8f   :  { %404 = vmatmul.mubr.msk.f32.vlgmr.msra.gmra.mxu0 %vm36_vm2, %v375_v12 }
  0x90   :  { %414 = vmatpush3.msk.msra.mxu0 %vm40_vm1, %v26_v4  ;;  %417 = vmatprep.mubr.msk.f32.mxu0 %vm472_vm0, %v471_v2 }
  0x91   :  { %v116_v14 = vpop.permute.xlu0 %115  ;;  %415 = vmatprep.subr.mxu0 %v471_v2  ;;  %v274_v15 = vpop.permute.xlu1 %273 }
  0x92   :  { %vm117_vm5 = vcmp.eq.s32.totalorder %v116_v14, %v28_v9  ;;  %416 = vmatpush3.msra.mxu0 %v25_v5  ;;  %vm275_vm6 = vcmp.eq.s32.totalorder %v274_v15, %v28_v9 }
  0x93   :  { %v378_v16 = vsel %vm117_vm5, 1.0, %v471_v2  ;;  %418 = vmatmul.mubr.msk.f32.vlgmr.msra.gmra.mxu0 %vm36_vm2, %v381_v13  ;;  %v384_v17 = vsel %vm275_vm6, 1.0, %v471_v2 }
  0x94   :  { %411 = vmatmul.mubr.msk.f32.vlgmr.msra.gmra.mxu1 %vm36_vm2, %v378_v16 }
  0x95   :  { %421 = vmatpush3.msk.msra.mxu1 %vm40_vm1, %v26_v4  ;;  %424 = vmatprep.mubr.msk.f32.mxu1 %vm472_vm0, %v471_v2 }
  0x96   :  { %422 = vmatprep.subr.mxu1 %v471_v2 }
  0x97   :  { %423 = vmatpush3.msra.mxu1 %v25_v5 }
  0x98   :  { %425 = vmatmul.mubr.msk.f32.vlgmr.msra.gmra.mxu1 %vm36_vm2, %v384_v17 }
 0x14f   :  { %v110_v18 = vpop.f32.mrf.mxu0 }
 0x151   :  { %v405_v19 = vpop.f32.mrf.mxu0 }
 0x153   :  { %v268_v20 = vpop.f32.mrf.mxu0 }
 0x154   :  { %v189_v21 = vpop.f32.mrf.mxu1  ;;  %356 = vrot.lane.b32.xlu0 %v268_v20, %s475_s0 }
 0x155   :  { %352 = vrot.lane.b32.xlu1 %v189_v21, %s476_s1  ;;  %v419_v22 = vpop.f32.mrf.mxu0 }
 0x156   :  { %v412_v23 = vpop.f32.mrf.mxu1 }
 0x158   :  { %v347_v24 = vpop.f32.mrf.mxu1 }
 0x159   :  { %360 = vrot.lane.b32.xlu1 %v347_v24, %s477_s18 }
 0x15a   :  { %v426_v25 = vpop.f32.mrf.mxu1 }
 0x1c6   :  { %v357_v28 = vpop.permute.xlu0 %356 }
 0x1c7   :  { %v353_v26 = vpop.permute.xlu1 %352 }
 0x1c8   :  { %v364_v27 = vsel %vm363_vm7, %v110_v18, %v353_v26 }
 0x1c9   :  { %v366_v30 = vsel %vm365_vm8, %v364_v27, %v357_v28 }
 0x1cb   :  { %v361_v29 = vpop.permute.xlu1 %360 }
 0x1cc   :  { %v368_v31 = vsel %vm367_vm9, %v366_v30, %v361_v29 }
 0x1cd   :  { %369 = vst [vmem:[%s516_s2] sm:$0x3] %v368_v31 }
 0x1ce   :  { %374 = vsyncpa [#allocation3], 1 }

</bundles_post_ra>
